<compile_context>
chip_gen: v7x
topology: tpu7x:2x2x1
jax: 0.10.0
libtpu: 0.0.40
codegen_flags: <defaults>
</compile_context>

<pallas_src>
import functools

import jax
import jax.numpy as jnp
from jax.experimental import pallas as pl
from jax.experimental.pallas import tpu as pltpu


# ------------------------------ helpers ------------------------------------

def _round_up(v, m):
    return ((v + m - 1) // m) * m


def _pick_tile(n):
    """Batch tile: big (<=128) for MXU/pipeline amortization, multiple of 16
    (bf16 sublane packing), and >= 2 grid tiles when the batch allows it so
    v7x megacore can shard the 'parallel' batch axis."""
    tile = min(128, _round_up(n, 16))
    if _round_up(n, tile) // tile < 2 and tile > 16:
        tile = max(16, _round_up((n + 1) // 2, 16))
    return tile


# ----------------------------- fused kernel --------------------------------

def _e2e_fused_kernel(x_ref, w1_ref, b1_ref, w2_ref, b2_ref,
                      wznr_ref, comp_ref, mean_ref, out_ref,
                      *, L, zdim, xy_w, hg_w, s3_w, znr_w):
    """HG surrogate + variance2confidence + PDM test/forward, fully fused.

    x_ref : (tile, D_in) bf16 batch tile.
    Resident weights (constant index_map -> stay in VMEM across grid):
      W1 (D_in, H1) bf16, b1 (1, H1) f32,
      W2 (H1, hg_w) bf16 = [W2_lm | W2_var | 0], b2 (1, hg_w) f32,
      Wznr (hg_w, znr_w) bf16 = rows [lm-half ; conf-half ; 0],
                                cols [Wz (zdim) | Wnr (9) | 0],
      Comp (znr_w, s3_w) bf16 = rows [zs ; 0], cols [Cx | Cy | Cz | 0],
      mean3d (1, s3_w) f32.
    out_ref : (tile, out_w) f32 lane-dense slab =
      [ xp|yp|pad (xy_w) | h2 band (hg_w) | s3 band (s3_w) | znr band (znr_w) ]
    written with four 128-aligned full-width (unmasked) stores.
    """
    f32 = jnp.float32
    bf = w1_ref.dtype

    # ---- HG surrogate head: 2-layer MLP -> merged [lm | var-logits | pad] ----
    h = jnp.dot(x_ref[...], w1_ref[...], preferred_element_type=f32)
    h = jnp.maximum(h + b1_ref[...], 0.0)
    h2 = jnp.dot(h.astype(bf), w2_ref[...], preferred_element_type=f32) + b2_ref[...]

    # numerically stable softplus -> positive variance (full band, EUP slot)
    var = jnp.maximum(h2, 0.0) + jnp.log1p(jnp.exp(-jnp.abs(h2)))
    # pdm.variance2confidence(var) = 1 / (1 + var)  (exact, parity with ref)
    conf = 1.0 / (1.0 + var)

    # feature band = [lm | conf | dont-care]; built via lane-index select
    # (no lane concat/slice).  Padded rows of Wznr are zero -> pad lanes inert.
    lane = jax.lax.broadcasted_iota(jnp.int32, h2.shape, 1)
    feat = jnp.where(lane < 2 * L, h2, conf)

    # ---- PDM "test": single merged dot -> [zs | nr | pad] ----
    znr = jnp.dot(feat.astype(bf), wznr_ref[...], preferred_element_type=f32)

    # ---- PDM "forward": merged components dot -> [s3x | s3y | s3z | pad] ----
    s3 = mean_ref[...] + jnp.dot(znr.astype(bf), comp_ref[...],
                                 preferred_element_type=f32)

    s3x = s3[:, 0:L]
    s3y = s3[:, L:2 * L]
    s3z = s3[:, 2 * L:3 * L]

    def nr(k):
        return znr[:, zdim + k:zdim + k + 1]

    # rigid 2D projection
    xp = s3x * nr(0) + s3y * nr(1) + s3z * nr(2) + nr(6)
    yp = s3x * nr(3) + s3y * nr(4) + s3z * nr(5) + nr(7)

    parts = [xp, yp]
    pad = xy_w - 2 * L
    if pad:
        parts.append(jnp.zeros((xp.shape[0], pad), f32))
    xy = jnp.concatenate(parts, axis=1)

    # ---- four 128-lane-aligned, full-width (unmasked) band stores ----
    o = 0
    out_ref[:, o:o + xy_w] = xy
    o += xy_w
    out_ref[:, o:o + hg_w] = h2          # lm lives in lanes [0:2L] of this band
    o += hg_w
    out_ref[:, o:o + s3_w] = s3
    o += s3_w
    out_ref[:, o:o + znr_w] = znr        # zs in [0:zdim], nr in [zdim:zdim+9]


# ------------------------------ forward ------------------------------------

def _e2e_forward(x_nchw, params, *, num_landmarks, zdim):
    """Functional E2E.forward (var_thresh=None, encoder=None path)."""
    N = x_nchw.shape[0]
    L = num_landmarks
    # pre-cast to bf16 -> halves the per-sample HBM->VMEM DMA bytes
    x_flat = x_nchw.reshape(N, -1).astype(jnp.bfloat16)
    D = x_flat.shape[1]

    tile = _pick_tile(N)
    n_pad = _round_up(N, tile)
    if n_pad != N:                                   # pad tail tile with zeros
        x_flat = jnp.pad(x_flat, ((0, n_pad - N), (0, 0)))

    # band widths (all multiples of 128 -> unmasked full-width stores)
    xy_w = _round_up(2 * L, 128)
    hg_w = params["W2"].shape[1]
    s3_w = params["Comp"].shape[1]
    znr_w = params["Wznr"].shape[1]
    out_w = xy_w + hg_w + s3_w + znr_w

    kernel = functools.partial(
        _e2e_fused_kernel, L=L, zdim=zdim,
        xy_w=xy_w, hg_w=hg_w, s3_w=s3_w, znr_w=znr_w)

    weights = (params["W1"], params["b1"],
               params["W2"], params["b2"],
               params["Wznr"], params["Comp"], params["mean3d"])

    in_specs = [pl.BlockSpec((tile, D), lambda i: (i, 0))]          # batch tile
    for w in weights:                                               # resident weights
        in_specs.append(pl.BlockSpec(w.shape, lambda i: (0, 0)))

    slab = pl.pallas_call(
        kernel,
        grid=(n_pad // tile,),
        in_specs=in_specs,
        out_specs=pl.BlockSpec((tile, out_w), lambda i: (i, 0)),
        out_shape=jax.ShapeDtypeStruct((n_pad, out_w), jnp.float32),
        compiler_params=pltpu.CompilerParams(
            dimension_semantics=("parallel",)),
    )(x_flat, *weights)

    slab = slab[:N]
    off_hg = xy_w
    off_s3 = off_hg + hg_w
    off_znr = off_s3 + s3_w

    xp = slab[:, 0:L]
    yp = slab[:, L:2 * L]
    pdm_prediction = jnp.stack([xp, yp], axis=-1)                    # (N, L, 2)
    lm = slab[:, off_hg:off_hg + 2 * L]
    hg_prediction = jnp.stack([lm[:, :L], lm[:, L:2 * L]], axis=-1)  # (N, L, 2)
    shape_3d = jnp.stack([slab[:, off_s3:off_s3 + L],
                          slab[:, off_s3 + L:off_s3 + 2 * L],
                          slab[:, off_s3 + 2 * L:off_s3 + 3 * L]],
                         axis=-1)                                    # (N, L, 3)
    zs = slab[:, off_znr:off_znr + zdim]
    nr = slab[:, off_znr + zdim:off_znr + zdim + 9]
    apply_pdm = jnp.arange(N, dtype=jnp.int32)       # var_thresh is None path
    return pdm_prediction, hg_prediction, shape_3d, zs, nr, apply_pdm


# ------------------------------ E2E wrapper --------------------------------

class E2EPallas:
    """JAX/Pallas port of E2E.forward (var_thresh=None, encoder=None path)."""

    def __init__(self, params, hg_bs, pdm_bs, num_landmarks, zdim,
                 verbose=False):
        self.params = params
        self.hg_bs = hg_bs          # retained for interface parity only;
        self.pdm_bs = pdm_bs        # the kernel batch tile is decoupled.
        self.L = num_landmarks
        self.zdim = zdim
        self.verbose = verbose
        self.variance_threshold = None
        self.encoder = None
        self._fwd = jax.jit(functools.partial(
            _e2e_forward, num_landmarks=num_landmarks, zdim=zdim))

    def __call__(self, x_nchw):
        if self.verbose:
            print("var thresh", self.variance_threshold)
        pdm_pred, hg_pred, shape_3d, zs, nr, apply_pdm = self._fwd(
            x_nchw, self.params)
        pdm_encoder_pred = None                       # encoder=None
        return (pdm_pred, hg_pred, shape_3d, zs, nr, apply_pdm,
                pdm_encoder_pred)


# ------------------------------ param init ---------------------------------

def make_params(key, d_in, h1, num_landmarks, zdim):
    L = num_landmarks
    ks = jax.random.split(key, 8)
    bf = jnp.bfloat16

    hg_w = _round_up(4 * L, 128)       # [lm(2L) | var(2L) | pad]
    znr_w = _round_up(zdim + 9, 128)   # [zs | nr | pad]
    s3_w = _round_up(3 * L, 128)       # [s3x | s3y | s3z | pad]

    W1 = jax.random.normal(ks[0], (d_in, h1), jnp.float32) * 0.05
    b1 = jax.random.normal(ks[1], (1, h1), jnp.float32) * 0.01
    W2 = jax.random.normal(ks[2], (h1, 4 * L), jnp.float32) * 0.05
    b2 = jax.random.normal(ks[3], (1, 4 * L), jnp.float32) * 0.01
    Wz = jax.random.normal(ks[4], (4 * L, zdim), jnp.float32) * 0.05
    Wnr = jax.random.normal(ks[5], (4 * L, 9), jnp.float32) * 0.05
    mean3d = jax.random.normal(ks[6], (1, 3 * L), jnp.float32) * 0.5
    Comp = jax.random.normal(ks[7], (zdim, 3 * L), jnp.float32) * 0.1

    # Merged, zero-padded, 128-lane-wide MXU operands (pads are inert).
    W2_p = jnp.zeros((h1, hg_w), jnp.float32).at[:, :4 * L].set(W2)
    b2_p = jnp.zeros((1, hg_w), jnp.float32).at[:, :4 * L].set(b2)
    Wznr = jnp.zeros((hg_w, znr_w), jnp.float32)
    Wznr = Wznr.at[:4 * L, :zdim].set(Wz).at[:4 * L, zdim:zdim + 9].set(Wnr)
    Comp_p = jnp.zeros((znr_w, s3_w), jnp.float32).at[:zdim, :3 * L].set(Comp)
    mean_p = jnp.zeros((1, s3_w), jnp.float32).at[:, :3 * L].set(mean3d)

    return {
        # MXU operands in bf16 (f32 accumulation in-kernel); biases/means f32.
        "W1": W1.astype(bf),
        "b1": b1,
        "W2": W2_p.astype(bf),
        "b2": b2_p,
        "Wznr": Wznr.astype(bf),
        "Comp": Comp_p.astype(bf),
        "mean3d": mean_p,
    }


# --------------------------------- main -------------------------------------

if __name__ == "__main__":
    N, C, H, W = 32, 3, 16, 16        # small NCHW batch (like PyTorch input)
    L, ZDIM, H1 = 16, 8, 128
    HG_BS, PDM_BS = 8, 16             # interface parity only (tile decoupled)

    key = jax.random.PRNGKey(0)
    k_x, k_p = jax.random.split(key)
    x = jax.random.normal(k_x, (N, C, H, W), jnp.float32)
    params = make_params(k_p, C * H * W, H1, L, ZDIM)

    model = E2EPallas(params, hg_bs=HG_BS, pdm_bs=PDM_BS,
                      num_landmarks=L, zdim=ZDIM, verbose=False)

    (pdm_pred, hg_pred, shape_3d, zs, nr, apply_pdm, enc_pred) = model(x)

    for out in (pdm_pred, hg_pred, shape_3d, zs, nr, apply_pdm):
        jax.block_until_ready(out)

    assert pdm_pred.shape == (N, L, 2)
    assert hg_pred.shape == (N, L, 2)
    assert shape_3d.shape == (N, L, 3)
    assert zs.shape == (N, ZDIM)
    assert nr.shape == (N, 9)
    assert apply_pdm.shape == (N,)
    assert enc_pred is None
    assert bool(jnp.all(jnp.isfinite(pdm_pred)))
    assert bool(jnp.all(jnp.isfinite(shape_3d)))

    print("KERNEL_OK")
</pallas_src>

<mosaic_0001>
module attributes {stable_mosaic.version = 11 : i64} {
  func.func @_e2e_fused_kernel(%arg0: i32, %arg1: memref<16x768xbf16, #tpu.memory_space<vmem>>, %arg2: memref<768x128xbf16, #tpu.memory_space<vmem>>, %arg3: memref<1x128xf32, #tpu.memory_space<vmem>>, %arg4: memref<128x128xbf16, #tpu.memory_space<vmem>>, %arg5: memref<1x128xf32, #tpu.memory_space<vmem>>, %arg6: memref<128x128xbf16, #tpu.memory_space<vmem>>, %arg7: memref<128x128xbf16, #tpu.memory_space<vmem>>, %arg8: memref<1x128xf32, #tpu.memory_space<vmem>>, %arg9: memref<16x512xf32, #tpu.memory_space<vmem>>) attributes {dimension_semantics = [#tpu.dimension_semantics<parallel>], iteration_bounds = array<i64: 2>, scalar_prefetch = 0 : i64, scratch_operands = 0 : i64, tpu.core_type = #tpu.core_type<tc>, window_params = [{transform_indices = @transform_0, window_bounds = array<i64: 16, 768>}, {pipeline_mode = #tpu.pipeline_mode<synchronous>, transform_indices = @transform_1, window_bounds = array<i64: 768, 128>}, {pipeline_mode = #tpu.pipeline_mode<synchronous>, transform_indices = @transform_2, window_bounds = array<i64: 1, 128>}, {pipeline_mode = #tpu.pipeline_mode<synchronous>, transform_indices = @transform_3, window_bounds = array<i64: 128, 128>}, {pipeline_mode = #tpu.pipeline_mode<synchronous>, transform_indices = @transform_4, window_bounds = array<i64: 1, 128>}, {pipeline_mode = #tpu.pipeline_mode<synchronous>, transform_indices = @transform_5, window_bounds = array<i64: 128, 128>}, {pipeline_mode = #tpu.pipeline_mode<synchronous>, transform_indices = @transform_6, window_bounds = array<i64: 128, 128>}, {pipeline_mode = #tpu.pipeline_mode<synchronous>, transform_indices = @transform_7, window_bounds = array<i64: 1, 128>}, {transform_indices = @transform_8, window_bounds = array<i64: 16, 512>}]} {
    %c0 = arith.constant 0 : index
    %c0_0 = arith.constant 0 : index
    %0 = vector.load %arg1[%c0, %c0_0] : memref<16x768xbf16, #tpu.memory_space<vmem>>, vector<16x768xbf16>
    %c0_1 = arith.constant 0 : index
    %c0_2 = arith.constant 0 : index
    %1 = vector.load %arg2[%c0_1, %c0_2] : memref<768x128xbf16, #tpu.memory_space<vmem>>, vector<768x128xbf16>
    %cst = arith.constant dense<0.000000e+00> : vector<16x128xf32>
    %2 = tpu.matmul %0, %1, %cst {dimension_numbers = #tpu.dot_dimension_numbers<[1], [0], [0], [1], [0, 0, 1, 1], [], []>} : vector<16x768xbf16>, vector<768x128xbf16>, vector<16x128xf32> -> vector<16x128xf32>
    %c0_3 = arith.constant 0 : index
    %c0_4 = arith.constant 0 : index
    %3 = vector.load %arg3[%c0_3, %c0_4] : memref<1x128xf32, #tpu.memory_space<vmem>>, vector<1x128xf32>
    %4 = vector.broadcast %3 : vector<1x128xf32> to vector<16x128xf32>
    %5 = arith.addf %2, %4 : vector<16x128xf32>
    %cst_5 = arith.constant 0.000000e+00 : f32
    %6 = vector.broadcast %cst_5 : f32 to vector<16x128xf32>
    %7 = arith.maximumf %5, %6 : vector<16x128xf32>
    %8 = arith.truncf %7 : vector<16x128xf32> to vector<16x128xbf16>
    %c0_6 = arith.constant 0 : index
    %c0_7 = arith.constant 0 : index
    %9 = vector.load %arg4[%c0_6, %c0_7] : memref<128x128xbf16, #tpu.memory_space<vmem>>, vector<128x128xbf16>
    %cst_8 = arith.constant dense<0.000000e+00> : vector<16x128xf32>
    %10 = tpu.matmul %8, %9, %cst_8 {dimension_numbers = #tpu.dot_dimension_numbers<[1], [0], [0], [1], [0, 0, 1, 1], [], []>} : vector<16x128xbf16>, vector<128x128xbf16>, vector<16x128xf32> -> vector<16x128xf32>
    %c0_9 = arith.constant 0 : index
    %c0_10 = arith.constant 0 : index
    %11 = vector.load %arg5[%c0_9, %c0_10] : memref<1x128xf32, #tpu.memory_space<vmem>>, vector<1x128xf32>
    %12 = vector.broadcast %11 : vector<1x128xf32> to vector<16x128xf32>
    %13 = arith.addf %10, %12 : vector<16x128xf32>
    %cst_11 = arith.constant 0.000000e+00 : f32
    %14 = vector.broadcast %cst_11 : f32 to vector<16x128xf32>
    %15 = arith.maximumf %13, %14 : vector<16x128xf32>
    %16 = math.absf %13 : vector<16x128xf32>
    %cst_12 = arith.constant 0.000000e+00 : f32
    %17 = vector.broadcast %cst_12 : f32 to vector<16x128xf32>
    %18 = arith.subf %17, %16 : vector<16x128xf32>
    %19 = math.exp %18 : vector<16x128xf32>
    %20 = math.log1p %19 : vector<16x128xf32>
    %21 = arith.addf %15, %20 : vector<16x128xf32>
    %cst_13 = arith.constant 1.000000e+00 : f32
    %22 = vector.broadcast %cst_13 : f32 to vector<16x128xf32>
    %23 = arith.addf %22, %21 : vector<16x128xf32>
    %cst_14 = arith.constant 1.000000e+00 : f32
    %24 = vector.broadcast %cst_14 : f32 to vector<16x128xf32>
    %25 = arith.divf %24, %23 : vector<16x128xf32>
    %26 = tpu.iota {dimensions = array<i32: 1>} : vector<16x128xi32>
    %c32_i32 = arith.constant 32 : i32
    %27 = vector.broadcast %c32_i32 : i32 to vector<16x128xi32>
    %28 = arith.cmpi slt, %26, %27 : vector<16x128xi32>
    %29 = arith.select %28, %13, %25 : vector<16x128xi1>, vector<16x128xf32>
    %30 = arith.truncf %29 : vector<16x128xf32> to vector<16x128xbf16>
    %c0_15 = arith.constant 0 : index
    %c0_16 = arith.constant 0 : index
    %31 = vector.load %arg6[%c0_15, %c0_16] : memref<128x128xbf16, #tpu.memory_space<vmem>>, vector<128x128xbf16>
    %cst_17 = arith.constant dense<0.000000e+00> : vector<16x128xf32>
    %32 = tpu.matmul %30, %31, %cst_17 {dimension_numbers = #tpu.dot_dimension_numbers<[1], [0], [0], [1], [0, 0, 1, 1], [], []>} : vector<16x128xbf16>, vector<128x128xbf16>, vector<16x128xf32> -> vector<16x128xf32>
    %c0_18 = arith.constant 0 : index
    %c0_19 = arith.constant 0 : index
    %33 = vector.load %arg8[%c0_18, %c0_19] : memref<1x128xf32, #tpu.memory_space<vmem>>, vector<1x128xf32>
    %34 = arith.truncf %32 : vector<16x128xf32> to vector<16x128xbf16>
    %c0_20 = arith.constant 0 : index
    %c0_21 = arith.constant 0 : index
    %35 = vector.load %arg7[%c0_20, %c0_21] : memref<128x128xbf16, #tpu.memory_space<vmem>>, vector<128x128xbf16>
    %cst_22 = arith.constant dense<0.000000e+00> : vector<16x128xf32>
    %36 = tpu.matmul %34, %35, %cst_22 {dimension_numbers = #tpu.dot_dimension_numbers<[1], [0], [0], [1], [0, 0, 1, 1], [], []>} : vector<16x128xbf16>, vector<128x128xbf16>, vector<16x128xf32> -> vector<16x128xf32>
    %37 = vector.broadcast %33 : vector<1x128xf32> to vector<16x128xf32>
    %38 = arith.addf %37, %36 : vector<16x128xf32>
    %39 = vector.extract_strided_slice %38 {offsets = [0, 0], sizes = [16, 16], strides = [1, 1]} : vector<16x128xf32> to vector<16x16xf32>
    %40 = vector.extract_strided_slice %38 {offsets = [0, 16], sizes = [16, 16], strides = [1, 1]} : vector<16x128xf32> to vector<16x16xf32>
    %41 = vector.extract_strided_slice %38 {offsets = [0, 32], sizes = [16, 16], strides = [1, 1]} : vector<16x128xf32> to vector<16x16xf32>
    %42 = vector.extract_strided_slice %32 {offsets = [0, 8], sizes = [16, 1], strides = [1, 1]} : vector<16x128xf32> to vector<16x1xf32>
    %43 = vector.broadcast %42 : vector<16x1xf32> to vector<16x16xf32>
    %44 = arith.mulf %39, %43 : vector<16x16xf32>
    %45 = vector.extract_strided_slice %32 {offsets = [0, 9], sizes = [16, 1], strides = [1, 1]} : vector<16x128xf32> to vector<16x1xf32>
    %46 = vector.broadcast %45 : vector<16x1xf32> to vector<16x16xf32>
    %47 = arith.mulf %40, %46 : vector<16x16xf32>
    %48 = arith.addf %44, %47 : vector<16x16xf32>
    %49 = vector.extract_strided_slice %32 {offsets = [0, 10], sizes = [16, 1], strides = [1, 1]} : vector<16x128xf32> to vector<16x1xf32>
    %50 = vector.broadcast %49 : vector<16x1xf32> to vector<16x16xf32>
    %51 = arith.mulf %41, %50 : vector<16x16xf32>
    %52 = arith.addf %48, %51 : vector<16x16xf32>
    %53 = vector.extract_strided_slice %32 {offsets = [0, 14], sizes = [16, 1], strides = [1, 1]} : vector<16x128xf32> to vector<16x1xf32>
    %54 = vector.broadcast %53 : vector<16x1xf32> to vector<16x16xf32>
    %55 = arith.addf %52, %54 : vector<16x16xf32>
    %56 = vector.extract_strided_slice %32 {offsets = [0, 11], sizes = [16, 1], strides = [1, 1]} : vector<16x128xf32> to vector<16x1xf32>
    %57 = vector.broadcast %56 : vector<16x1xf32> to vector<16x16xf32>
    %58 = arith.mulf %39, %57 : vector<16x16xf32>
    %59 = vector.extract_strided_slice %32 {offsets = [0, 12], sizes = [16, 1], strides = [1, 1]} : vector<16x128xf32> to vector<16x1xf32>
    %60 = vector.broadcast %59 : vector<16x1xf32> to vector<16x16xf32>
    %61 = arith.mulf %40, %60 : vector<16x16xf32>
    %62 = arith.addf %58, %61 : vector<16x16xf32>
    %63 = vector.extract_strided_slice %32 {offsets = [0, 13], sizes = [16, 1], strides = [1, 1]} : vector<16x128xf32> to vector<16x1xf32>
    %64 = vector.broadcast %63 : vector<16x1xf32> to vector<16x16xf32>
    %65 = arith.mulf %41, %64 : vector<16x16xf32>
    %66 = arith.addf %62, %65 : vector<16x16xf32>
    %67 = vector.extract_strided_slice %32 {offsets = [0, 15], sizes = [16, 1], strides = [1, 1]} : vector<16x128xf32> to vector<16x1xf32>
    %68 = vector.broadcast %67 : vector<16x1xf32> to vector<16x16xf32>
    %69 = arith.addf %66, %68 : vector<16x16xf32>
    %cst_23 = arith.constant 0.000000e+00 : f32
    %70 = vector.broadcast %cst_23 : f32 to vector<16x96xf32>
    %71 = tpu.concatenate %55, %69, %70 in 1 : vector<16x16xf32>, vector<16x16xf32>, vector<16x96xf32> -> vector<16x128xf32>
    %c0_24 = arith.constant 0 : index
    %c0_25 = arith.constant 0 : index
    %72 = vector.load %arg9[%c0_24, %c0_25] : memref<16x512xf32, #tpu.memory_space<vmem>>, vector<16x128xf32>
    tpu.vector_store %arg9[%c0_24, %c0_25], %71 {strides = array<i32>} : memref<16x512xf32, #tpu.memory_space<vmem>>, vector<16x128xf32>,
    %c0_26 = arith.constant 0 : index
    %c128 = arith.constant 128 : index
    %73 = vector.load %arg9[%c0_26, %c128] : memref<16x512xf32, #tpu.memory_space<vmem>>, vector<16x128xf32>
    tpu.vector_store %arg9[%c0_26, %c128], %13 {strides = array<i32>} : memref<16x512xf32, #tpu.memory_space<vmem>>, vector<16x128xf32>,
    %c0_27 = arith.constant 0 : index
    %c256 = arith.constant 256 : index
    %74 = vector.load %arg9[%c0_27, %c256] : memref<16x512xf32, #tpu.memory_space<vmem>>, vector<16x128xf32>
    tpu.vector_store %arg9[%c0_27, %c256], %38 {strides = array<i32>} : memref<16x512xf32, #tpu.memory_space<vmem>>, vector<16x128xf32>,
    %c0_28 = arith.constant 0 : index
    %c384 = arith.constant 384 : index
    %75 = vector.load %arg9[%c0_28, %c384] : memref<16x512xf32, #tpu.memory_space<vmem>>, vector<16x128xf32>
    tpu.vector_store %arg9[%c0_28, %c384], %32 {strides = array<i32>} : memref<16x512xf32, #tpu.memory_space<vmem>>, vector<16x128xf32>,
    return
  }
  func.func @transform_0(%arg0: i32) -> (i32, i32) {
    %c0_i32 = arith.constant 0 : i32
    %c0_i32_0 = arith.constant 0 : i32
    return %arg0, %c0_i32 : i32, i32
  }
  func.func @transform_1(%arg0: i32) -> (i32, i32) {
    %c0_i32 = arith.constant 0 : i32
    %c0_i32_0 = arith.constant 0 : i32
    %c0_i32_1 = arith.constant 0 : i32
    return %c0_i32, %c0_i32_0 : i32, i32
  }
  func.func @transform_2(%arg0: i32) -> (i32, i32) {
    %c0_i32 = arith.constant 0 : i32
    %c0_i32_0 = arith.constant 0 : i32
    %c0_i32_1 = arith.constant 0 : i32
    return %c0_i32, %c0_i32_0 : i32, i32
  }
  func.func @transform_3(%arg0: i32) -> (i32, i32) {
    %c0_i32 = arith.constant 0 : i32
    %c0_i32_0 = arith.constant 0 : i32
    %c0_i32_1 = arith.constant 0 : i32
    return %c0_i32, %c0_i32_0 : i32, i32
  }
  func.func @transform_4(%arg0: i32) -> (i32, i32) {
    %c0_i32 = arith.constant 0 : i32
    %c0_i32_0 = arith.constant 0 : i32
    %c0_i32_1 = arith.constant 0 : i32
    return %c0_i32, %c0_i32_0 : i32, i32
  }
  func.func @transform_5(%arg0: i32) -> (i32, i32) {
    %c0_i32 = arith.constant 0 : i32
    %c0_i32_0 = arith.constant 0 : i32
    %c0_i32_1 = arith.constant 0 : i32
    return %c0_i32, %c0_i32_0 : i32, i32
  }
  func.func @transform_6(%arg0: i32) -> (i32, i32) {
    %c0_i32 = arith.constant 0 : i32
    %c0_i32_0 = arith.constant 0 : i32
    %c0_i32_1 = arith.constant 0 : i32
    return %c0_i32, %c0_i32_0 : i32, i32
  }
  func.func @transform_7(%arg0: i32) -> (i32, i32) {
    %c0_i32 = arith.constant 0 : i32
    %c0_i32_0 = arith.constant 0 : i32
    %c0_i32_1 = arith.constant 0 : i32
    return %c0_i32, %c0_i32_0 : i32, i32
  }
  func.func @transform_8(%arg0: i32) -> (i32, i32) {
    %c0_i32 = arith.constant 0 : i32
    %c0_i32_0 = arith.constant 0 : i32
    return %arg0, %c0_i32 : i32, i32
  }
}

</mosaic_0001>

<bundles_post_ra>
// kernel: _e2e_forward.1
= control target key start
LH: loop header
LB: loop body
LE: loop exit
PB: predicated region body
PF: predicated region fallthrough
CT: control target
= control target key end

     0   :  { %s1886_s27 = smov 0   ;;  %s2215_s0 = inlined_call_operand.vmem [shape: bf16[32,768], index: 0, kind: input, shape index: {}]   ;;  %s2216_s1 = inlined_call_operand.vmem [shape: bf16[768,128], index: 1, kind: input, shape index: {}]   ;;  %s2217_s2 = inlined_call_operand.vmem [shape: f32[1,128], index: 2, kind: input, shape index: {}]   ;;  %s2218_s3 = inlined_call_operand.vmem [shape: bf16[128,128], index: 3, kind: input, shape index: {}]   ;;  %s2219_s4 = inlined_call_operand.vmem [shape: f32[1,128], index: 4, kind: input, shape index: {}]   ;;  %s2220_s5 = inlined_call_operand.vmem [shape: bf16[128,128], index: 5, kind: input, shape index: {}]   ;;  %s2221_s6 = inlined_call_operand.vmem [shape: bf16[128,128], index: 6, kind: input, shape index: {}]   ;;  %s2222_s7 = inlined_call_operand.vmem [shape: f32[1,128], index: 7, kind: input, shape index: {}]   ;;  %s2223_s8 = inlined_call_operand.vmem [shape: f32[32,512], index: 8, kind: output, shape index: {}]  }
   0x1 LB: > { %s1444_s28 = sadd.s32 4294967295, %s1826_s27   ;;  %p1448_p0 = scmp.ge.s32.totalorder %s1826_s27, 1  ;;  %s1826_s27 = sphi %s1886_s27, %s18_s27  }
   0x2   : > { %p264_p1 = scmp.lt.s32.totalorder %s1826_s27, 3 }
   0x4   : > { %p265_p2 = pnand %p1448_p0, %p264_p1 }
   0x5   : > { %v1727_v0 = vld [vmem:[%s2216_s1 + $0x40] sm:$0xff] (!%p265_p2)   ;;  %v1731_v4 = vld [vmem:[%s2216_s1 + $0x48] sm:$0xff] (!%p265_p2)   ;;  %v1735_v8 = vld [vmem:[%s2216_s1 + $0x50] sm:$0xff] (!%p265_p2)   ;;  %s1449_s15 = sshll.u32 (!%p265_p2), %s1444_s28, 1  ;;  %v1828_v55 = vmov (!%p265_p2), 0.0   ;;  %vm1829_vm0 = vmmov (!%p265_p2), 0  }
   0x6   : > { %268 = sbr.rel (%p265_p2) target bundleno = 1236 (0x4d4), region = 52  ;;  %v1728_v1 = vld [vmem:[%s2216_s1] sm:$0xff] (!%p265_p2)   ;;  %1538 = vmatprep.subr.bf16.mxu0 (!%p265_p2), %v1727_v0  ;;  %v1732_v5 = vld [vmem:[%s2216_s1 + $0x8] sm:$0xff] (!%p265_p2)   ;;  %v1736_v9 = vld [vmem:[%s2216_s1 + $0x10] sm:$0xff] (!%p265_p2)   ;;  %p301_p3 = scmp.lt.s32.totalorder (!%p265_p2), %s1449_s15, 3  ;;  %vm1372_vm4 = vcmask (!%p265_p2), 130048  }
   0x7   : > { %v1729_v2 = vld [vmem:[%s2216_s1 + $0xc0] sm:$0xff] (!%p265_p2)   ;;  %1539 = vmatpush3.bf16.msra.mxu0 (!%p265_p2), %v1728_v1  ;;  %v1733_v6 = vld [vmem:[%s2216_s1 + $0xc8] sm:$0xff] (!%p265_p2)   ;;  %v1737_v10 = vld [vmem:[%s2216_s1 + $0xd0] sm:$0xff] (!%p265_p2)   ;;  %s1837_s25 = smov (!%p265_p2), 112   ;;  %s1838_s26 = smov (!%p265_p2), 96   ;;  %vm1375_vm5 = vcmask (!%p265_p2), 261120  }
   0x8   : > { %v1730_v3 = vld [vmem:[%s2216_s1 + $0x80] sm:$0xff] (!%p265_p2)   ;;  %1560 = vmatprep.subr.bf16.mxu1 (!%p265_p2), %v1729_v2  ;;  %1540 = vmatprep.subr.bf16.mxu0 (!%p265_p2), %v1731_v4  ;;  %v1734_v7 = vld [vmem:[%s2216_s1 + $0x88] sm:$0xff] (!%p265_p2)   ;;  %v1738_v11 = vld [vmem:[%s2216_s1 + $0x90] sm:$0xff] (!%p265_p2)   ;;  %s1840_s29 = smov (!%p265_p2), 16  }
   0x9   : > { %1561 = vmatpush3.bf16.msra.mxu1 (!%p265_p2), %v1730_v3  ;;  %v1739_v12 = vld [vmem:[%s2216_s1 + $0x58] sm:$0xff] (!%p265_p2)   ;;  %v1743_v16 = vld [vmem:[%s2216_s1 + $0x60] sm:$0xff] (!%p265_p2)   ;;  %v1747_v20 = vld [vmem:[%s2216_s1 + $0x68] sm:$0xff] (!%p265_p2)  }
   0xa   : > { %1562 = vmatprep.subr.bf16.mxu1 (!%p265_p2), %v1733_v6  ;;  %v1740_v13 = vld [vmem:[%s2216_s1 + $0x18] sm:$0xff] (!%p265_p2)   ;;  %v1744_v17 = vld [vmem:[%s2216_s1 + $0x20] sm:$0xff] (!%p265_p2)   ;;  %v1748_v21 = vld [vmem:[%s2216_s1 + $0x28] sm:$0xff] (!%p265_p2)  }
   0xb   : > { %1541 = vmatpush3.bf16.msra.mxu0 (!%p265_p2), %v1732_v5  ;;  %v1741_v14 = vld [vmem:[%s2216_s1 + $0xd8] sm:$0xff] (!%p265_p2)   ;;  %v1745_v18 = vld [vmem:[%s2216_s1 + $0xe0] sm:$0xff] (!%p265_p2)   ;;  %v1749_v22 = vld [vmem:[%s2216_s1 + $0xe8] sm:$0xff] (!%p265_p2)  }
   0xc   : > { %1542 = vmatprep.subr.bf16.mxu0 (!%p265_p2), %v1735_v8  ;;  %v1742_v15 = vld [vmem:[%s2216_s1 + $0x98] sm:$0xff] (!%p265_p2)   ;;  %v1746_v19 = vld [vmem:[%s2216_s1 + $0xa0] sm:$0xff] (!%p265_p2)   ;;  %v1750_v23 = vld [vmem:[%s2216_s1 + $0xa8] sm:$0xff] (!%p265_p2)  }
   0xd   : > { %1563 = vmatpush3.bf16.msra.mxu1 %v1734_v7  ;;  %s2225_s15 = smov (!%p301_p3, %s1449_s15), 3  ;;  %v1751_v24 = vld [vmem:[%s2216_s1 + $0x70] sm:$0xff]   ;;  %v1755_v28 = vld [vmem:[%s2216_s1 + $0x78] sm:$0xff]   ;;  %v1762_v34 = vld [vmem:[%s2216_s1 + $0x140] sm:$0xff]  }
   0xe   : > { %1564 = vmatprep.subr.bf16.mxu1 %v1737_v10  ;;  %s1691_s18 = smul.u32 24, %s2225_s15  ;;  %v1752_v25 = vld [vmem:[%s2216_s1 + $0x30] sm:$0xff]   ;;  %v1756_v29 = vld [vmem:[%s2216_s1 + $0x38] sm:$0xff]   ;;  %v1766_v37 = vld [vmem:[%s2216_s1 + $0x100] sm:$0xff]   ;;  %s1537_s17 = sshll.u32 %s2225_s15, 5 }
   0xf   : > { %1543 = vmatpush3.bf16.msra.mxu0 %v1736_v9  ;;  %v1753_v26 = vld [vmem:[%s2216_s1 + $0xf0] sm:$0xff]   ;;  %v1757_v30 = vld [vmem:[%s2216_s1 + $0xf8] sm:$0xff]   ;;  %v1767_v38 = vld [vmem:[%s2216_s1 + $0x148] sm:$0xff]   ;;  %s2163_s22 = scalar_lea.vmem %s2223_s8, %s1537_s17 }
  0x10   : > { %1544 = vmatprep.subr.bf16.mxu0 %v1739_v12  ;;  %v1754_v27 = vld [vmem:[%s2216_s1 + $0xb0] sm:$0xff]   ;;  %s1989_s30 = scalar_lea.vmem %s2215_s0, %s1691_s18  ;;  %v1761_v33 = vld [vmem:[%s2216_s1 + $0xb8] sm:$0xff]   ;;  %v1768_v39 = vld [vmem:[%s2216_s1 + $0x108] sm:$0xff]  }
  0x11   : > { %1565 = vmatpush3.bf16.msra.mxu1 %v1738_v11  ;;  %v1758_v31 = vld [vmem:[%s1989_s30] ss:$24 sps:$4 sm:$0xff]   ;;  %v1760_v32 = vld [vmem:[%s1989_s30 + $0x4] ss:$24 sps:$4 sm:$0xff]   ;;  %v1769_v40 = vld [vmem:[%s2216_s1 + $0x150] sm:$0xff]  }
  0x12   : > { %1566 = vmatprep.subr.bf16.mxu1 %v1741_v14  ;;  %774 = vmatprep.mubr.bf16.mxu0 %v1760_v32  ;;  %v1763_v35 = vld [vmem:[%s1989_s30 + $0x8] ss:$24 sps:$4 sm:$0xff]   ;;  %v1765_v36 = vld [vmem:[%s1989_s30 + $0xc] ss:$24 sps:$4 sm:$0xff]   ;;  %v1770_v41 = vld [vmem:[%s2216_s1 + $0x110] sm:$0xff]  }
  0x13   : > { %1545 = vmatpush3.bf16.msra.mxu0 %v1740_v13  ;;  %815 = vmatprep.mubr.bf16.mxu1 %v1765_v36  ;;  %v1771_v42 = vld [vmem:[%s2216_s1 + $0x158] sm:$0xff]   ;;  %v1773_v44 = vld [vmem:[%s2216_s1 + $0x160] sm:$0xff]   ;;  %v1775_v46 = vld [vmem:[%s2216_s1 + $0x168] sm:$0xff]   ;;  %v1830_v36 = vmov 13  }
  0x14   : > { %1546 = vmatprep.subr.bf16.mxu0 %v1743_v16  ;;  %v1772_v43 = vld [vmem:[%s2216_s1 + $0x118] sm:$0xff]   ;;  %v1774_v45 = vld [vmem:[%s2216_s1 + $0x120] sm:$0xff]   ;;  %v1783_v47 = vld [vmem:[%s1989_s30 + $0x14] ss:$24 sps:$4 sm:$0xff]   ;;  %1714 = vset.pattern.permute.xlu1 %v1830_v36 }
  0x15   : > { %1567 = vmatpush3.bf16.msra.mxu1 %v1742_v15  ;;  %v1776_v48 = vld [vmem:[%s2216_s1 + $0x128] sm:$0xff]   ;;  %v1777_v49 = vld [vmem:[%s2216_s1 + $0x170] sm:$0xff]   ;;  %v1779_v51 = vld [vmem:[%s2216_s1 + $0x178] sm:$0xff]  }
  0x16   : > { %1568 = vmatprep.subr.bf16.mxu1 %v1745_v18  ;;  %v1778_v50 = vld [vmem:[%s2216_s1 + $0x130] sm:$0xff]   ;;  %v1780_v52 = vld [vmem:[%s2216_s1 + $0x138] sm:$0xff]   ;;  %v1784_v54 = vld [vmem:[%s2218_s3] sm:$0xff]  }
  0x17   : > { %1547 = vmatpush3.bf16.msra.mxu0 %v1744_v17  ;;  %v1781_v53 = vld [vmem:[%s1989_s30 + $0x10] ss:$24 sps:$4 sm:$0xff]   ;;  %v1787_v58 = vld [vmem:[%s2218_s3 + $0x18] sm:$0xff]   ;;  %v1788_v59 = vld [vmem:[%s2218_s3 + $0x20] sm:$0xff]  }
  0x18   : > { %1548 = vmatprep.subr.bf16.mxu0 %v1747_v20  ;;  %v1785_v56 = vld [vmem:[%s2218_s3 + $0x8] sm:$0xff]   ;;  %v1786_v57 = vld [vmem:[%s2218_s3 + $0x10] sm:$0xff]   ;;  %v1791_v62 = vld [vmem:[%s2218_s3 + $0x38] sm:$0xff]  }
  0x19   : > { %1569 = vmatpush3.bf16.msra.mxu1 %v1746_v19  ;;  %v1789_v60 = vld [vmem:[%s2218_s3 + $0x28] sm:$0xff]   ;;  %v1790_v61 = vld [vmem:[%s2218_s3 + $0x30] sm:$0xff]   ;;  %v1454_v0 = vld [vmem:[%s2217_s2] ss:$0 sm:$0xff] }
  0x1a   : > { %1570 = vmatprep.subr.bf16.mxu1 %v1749_v22  ;;  %v1797_v32 = vld [vmem:[%s2220_s5 + $0x28] sm:$0xff]  }
  0x1b   : > { %1549 = vmatpush3.bf16.msra.mxu0 %v1748_v21 }
  0x1c   : > { %1550 = vmatprep.subr.bf16.mxu0 %v1751_v24 }
  0x1d   : > { %1571 = vmatpush3.bf16.msra.mxu1 %v1750_v23 }
  0x1e   : > { %1572 = vmatprep.subr.bf16.mxu1 %v1753_v26 }
  0x1f   : > { %1551 = vmatpush3.bf16.msra.mxu0 %v1752_v25 }
  0x20   : > { %1552 = vmatprep.subr.bf16.mxu0 %v1755_v28  ;;  %v1793_v28 = vld [vmem:[%s2220_s5 + $0x8] sm:$0xff]  }
  0x21   : > { %1573 = vmatpush3.bf16.msra.mxu1 %v1754_v27  ;;  %v1792_v27 = vld [vmem:[%s2220_s5] sm:$0xff]  }
  0x22   : > { %1574 = vmatprep.subr.bf16.mxu1 %v1757_v30  ;;  %v1795_v30 = vld [vmem:[%s2220_s5 + $0x18] sm:$0xff]  }
  0x23   : > { %1553 = vmatpush3.bf16.msra.mxu0 %v1756_v29  ;;  %v1794_v29 = vld [vmem:[%s2220_s5 + $0x10] sm:$0xff]  }
  0x24   : > { %1582 = vmatprep.subr.bf16.mxu0 %v1762_v34  ;;  %v1799_v34 = vld [vmem:[%s2220_s5 + $0x38] sm:$0xff]  }
  0x25   : > { %1575 = vmatpush3.bf16.msra.mxu1 %v1761_v33  ;;  %v1798_v33 = vld [vmem:[%s2220_s5 + $0x30] sm:$0xff]  }
  0x26   : > { %775 = vmatmul.mubr.bf16.vlgmr.msra.gmra.mrb[0].mxu0 %v1758_v31  ;;  %1631 = vmatprep.subr.bf16.mxu1 %v1828_v55  ;;  %v1796_v31 = vld [vmem:[%s2220_s5 + $0x20] sm:$0xff]  }
  0x27   : > { %1583 = vmatpush3.bf16.msra.mxu0 %v1766_v37  ;;  %856 = vmatprep.mubr.bf16.mxu0 %v1783_v47  ;;  %v1831_v37 = vmov 12  }
  0x28   : > { %816 = vmatmul.mubr.bf16.vlgmr.msra.gmra.mrb[0].mxu1 %v1763_v35  ;;  %1584 = vmatprep.subr.bf16.mxu0 %v1767_v38  ;;  %v1800_v35 = vld [vmem:[%s2221_s6] sm:$0xff]   ;;  %v1801_v38 = vld [vmem:[%s2221_s6 + $0x8] sm:$0xff]  }
  0x29   : > { %1632 = vmatpush3.bf16.msra.mxu1 %v1784_v54  ;;  %1647 = vmatprep.mubr.msk.bf16.mxu1 %vm1829_vm0, %v1828_v55 }
  0x2a   : > { %1633 = vmatprep.subr.bf16.mxu1 %v1828_v55  ;;  %1713 = vset.pattern.permute.xlu0 %v1831_v37  ;;  %v1534_v37 = vld [vmem:[%s2222_s7] ss:$0 sm:$0xff] }
  0x2b   : > { %1585 = vmatpush3.bf16.msra.mxu0 %v1768_v39  ;;  %v1802_v39 = vld [vmem:[%s2221_s6 + $0x10] sm:$0xff]  }
  0x2c   : > { %1586 = vmatprep.subr.bf16.mxu0 %v1769_v40  ;;  %v1803_v40 = vld [vmem:[%s2221_s6 + $0x18] sm:$0xff]  }
  0x2d   : > { %1634 = vmatpush3.bf16.msra.mxu1 %v1785_v56 }
  0x2e   : > { %1635 = vmatprep.subr.bf16.mxu1 %v1828_v55 }
  0x2f   : > { %1587 = vmatpush3.bf16.msra.mxu0 %v1770_v41  ;;  %v1804_v41 = vld [vmem:[%s2221_s6 + $0x20] sm:$0xff]  }
  0x30   : > { %1588 = vmatprep.subr.bf16.mxu0 %v1771_v42  ;;  %v1805_v42 = vld [vmem:[%s2221_s6 + $0x28] sm:$0xff]  }
  0x31   : > { %1636 = vmatpush3.bf16.msra.mxu1 %v1786_v57 }
  0x32   : > { %1637 = vmatprep.subr.bf16.mxu1 %v1828_v55 }
  0x33   : > { %1589 = vmatpush3.bf16.msra.mxu0 %v1772_v43  ;;  %v1806_v43 = vld [vmem:[%s2221_s6 + $0x30] sm:$0xff]  }
  0x34   : > { %1590 = vmatprep.subr.bf16.mxu0 %v1773_v44  ;;  %v1509_v44 = vld [vmem:[%s2219_s4] ss:$0 sm:$0xff] }
  0x35   : > { %1638 = vmatpush3.bf16.msra.mxu1 %v1787_v58 }
  0x36   : > { %1639 = vmatprep.subr.bf16.mxu1 %v1828_v55 }
  0x37   : > { %1591 = vmatpush3.bf16.msra.mxu0 %v1774_v45 }
  0x38   : > { %1592 = vmatprep.subr.bf16.mxu0 %v1775_v46 }
  0x39   : > { %1640 = vmatpush3.bf16.msra.mxu1 %v1788_v59 }
  0x3a   : > { %1641 = vmatprep.subr.bf16.mxu1 %v1828_v55 }
  0x3b   : > { %1593 = vmatpush3.bf16.msra.mxu0 %v1776_v48 }
  0x3c   : > { %1594 = vmatprep.subr.bf16.mxu0 %v1777_v49 }
  0x3d   : > { %1642 = vmatpush3.bf16.msra.mxu1 %v1789_v60 }
  0x3e   : > { %1643 = vmatprep.subr.bf16.mxu1 %v1828_v55 }
  0x3f   : > { %1595 = vmatpush3.bf16.msra.mxu0 %v1778_v50 }
  0x40   : > { %1596 = vmatprep.subr.bf16.mxu0 %v1779_v51 }
  0x41   : > { %1644 = vmatpush3.bf16.msra.mxu1 %v1790_v61 }
  0x42   : > { %1645 = vmatprep.subr.bf16.mxu1 %v1828_v55 }
  0x43   : > { %1597 = vmatpush3.bf16.msra.mxu0 %v1780_v52 }
  0x44   : > { %1651 = vmatprep.subr.bf16.mxu0 %v1828_v55 }
  0x45   : > { %1646 = vmatpush3.bf16.msra.mxu1 %v1791_v62 }
  0x46   : > { %857 = vmatmul.mubr.bf16.vlgmr.msra.gmra.mrb[4].mxu0 %v1781_v53  ;;  %1671 = vmatprep.subr.bf16.mxu1 %v1828_v55 }
  0x47   : > { %1667 = vmatprep.mubr.msk.bf16.mxu0 %vm1829_vm0, %v1828_v55  ;;  %1652 = vmatpush3.bf16.msra.mxu0 %v1792_v27 }
  0x48   : > { %1653 = vmatprep.subr.bf16.mxu0 %v1828_v55 }
  0x4b   : > { %1654 = vmatpush3.bf16.msra.mxu0 %v1793_v28 }
  0x4c   : > { %1655 = vmatprep.subr.bf16.mxu0 %v1828_v55 }
  0x4f   : > { %1656 = vmatpush3.bf16.msra.mxu0 %v1794_v29 }
  0x50   : > { %1657 = vmatprep.subr.bf16.mxu0 %v1828_v55 }
  0x53   : > { %1658 = vmatpush3.bf16.msra.mxu0 %v1795_v30  ;;  %v1832_v30 = vmov 11  }
  0x54   : > { %1659 = vmatprep.subr.bf16.mxu0 %v1828_v55 }
  0x57   : > { %1660 = vmatpush3.bf16.msra.mxu0 %v1796_v31  ;;  %v1833_v31 = vmov 9  }
  0x58   : > { %1661 = vmatprep.subr.bf16.mxu0 %v1828_v55 }
  0x5b   : > { %1662 = vmatpush3.bf16.msra.mxu0 %v1797_v32  ;;  %v1834_v32 = vmov 10  }
  0x5c   : > { %1663 = vmatprep.subr.bf16.mxu0 %v1828_v55 }
  0x5f   : > { %1664 = vmatpush3.bf16.msra.mxu0 %v1798_v33  ;;  %v1835_v33 = vmov 15  }
  0x60   : > { %1665 = vmatprep.subr.bf16.mxu0 %v1828_v55 }
  0x63   : > { %1666 = vmatpush3.bf16.msra.mxu0 %v1799_v34  ;;  %v1836_v34 = vmov 8  }
  0xf9   : > { %v1554_v63 = vpop.f32.mrb[0].mxu0 }
  0xfa   : > { %v1555_v1 = vpop.f32.mrb[1].mxu0 }
  0xfb   : > { %v1556_v2 = vadd.f32 %v1555_v1, %v1554_v63  ;;  %v1557_v3 = vpop.f32.mrb[2].mxu0  ;;  %v1576_v4 = vpop.f32.mrb[0].mxu1 }
  0xfc   : > { %v1558_v5 = vpop.f32.mrb[3].mxu0  ;;  %v1577_v8 = vpop.f32.mrb[1].mxu1 }
  0xfd   : > { %v777_v6 = vadd.f32 %v1556_v2, %v1454_v0  ;;  %v1559_v7 = vadd.f32 %v1558_v5, %v1557_v3  ;;  %v1578_v9 = vadd.f32 %v1577_v8, %v1576_v4  ;;  %v1579_v10 = vpop.f32.mrb[2].mxu1 }
  0xfe   : > { %v1580_v12 = vpop.f32.mrb[3].mxu1 }
  0xff   : > { %v780_v11 = vadd.f32 %v1559_v7, %v1454_v0  ;;  %v818_v13 = vadd.f32 %v1578_v9, %v777_v6  ;;  %v1581_v14 = vadd.f32 %v1580_v12, %v1579_v10 }
 0x101   : > { %v821_v15 = vadd.f32 %v1581_v14, %v780_v11 }
 0x119   : > { %v1598_v16 = vpop.f32.mrb[4].mxu0 }
 0x11a   : > { %v1599_v17 = vpop.f32.mrb[5].mxu0 }
 0x11b   : > { %v1600_v18 = vadd.f32 %v1599_v17, %v1598_v16  ;;  %v1601_v19 = vpop.f32.mrb[6].mxu0  ;;  %v1016_v17 = vlaneseq }
 0x11c   : > { %v1602_v20 = vpop.f32.mrb[7].mxu0 }
 0x11d   : > { %v859_v21 = vadd.f32 %v1600_v18, %v818_v13  ;;  %v1603_v22 = vadd.f32 %v1602_v20, %v1601_v19  ;;  %v1017_v18 = vand.u32 127, %v1016_v17 }
 0x11f   : > { %v862_v23 = vadd.f32 %v1603_v22, %v821_v15  ;;  %v865_v24 = vmax.f32 %v859_v21, 0.0  ;;  %vm1018_vm3 = vcmp.lt.s32.totalorder %v1017_v18, 32 }
 0x121   : > { %v866_v25 = vmax.f32 %v862_v23, 0.0 }
 0x123   : > { %v867_v26 = vpack.c.bf16 %v866_v25, %v865_v24  ;;  %v1807_v24 = vld [vmem:[%s2221_s6 + $0x38] sm:$0xff]  }
 0x125   : > { %1648 = vmatmul.mubr.bf16.vlgmr.msra.gmra.mrb[4].mxu1 %v867_v26 }
 0x126   : > { %1687 = vmatprep.mubr.msk.bf16.mxu1 %vm1829_vm0, %v1828_v55  ;;  %1672 = vmatpush3.bf16.msra.mxu1 %v1800_v35 }
 0x127   : > { %1673 = vmatprep.subr.bf16.mxu1 %v1828_v55 }
 0x12a   : > { %1674 = vmatpush3.bf16.msra.mxu1 %v1801_v38 }
 0x12b   : > { %1675 = vmatprep.subr.bf16.mxu1 %v1828_v55 }
 0x12e   : > { %1676 = vmatpush3.bf16.msra.mxu1 %v1802_v39 }
 0x12f   : > { %1677 = vmatprep.subr.bf16.mxu1 %v1828_v55 }
 0x132   : > { %1678 = vmatpush3.bf16.msra.mxu1 %v1803_v40 }
 0x133   : > { %1679 = vmatprep.subr.bf16.mxu1 %v1828_v55 }
 0x136   : > { %1680 = vmatpush3.bf16.msra.mxu1 %v1804_v41 }
 0x137   : > { %1681 = vmatprep.subr.bf16.mxu1 %v1828_v55 }
 0x13a   : > { %1682 = vmatpush3.bf16.msra.mxu1 %v1805_v42 }
 0x13b   : > { %1683 = vmatprep.subr.bf16.mxu1 %v1828_v55 }
 0x13e   : > { %1684 = vmatpush3.bf16.msra.mxu1 %v1806_v43 }
 0x13f   : > { %1685 = vmatprep.subr.bf16.mxu1 %v1828_v55 }
 0x142   : > { %1686 = vmatpush3.bf16.msra.mxu1 %v1807_v24 }
 0x1f8   : > { %v973_v45 = vpop.f32.mrb[4].mxu1 }
 0x1f9   : > { %v974_v46 = vadd.f32 %v1509_v44, %v973_v45  ;;  %v1649_v47 = vpop.f32.mrb[5].mxu1 }
 0x1fa   : > { %v976_v48 = vpop.f32.mrb[6].mxu1 }
 0x1fb   : > { %v982_v49 = vand.u32 2147483647, %v974_v46  ;;  %1380 = vst [vmem:[%s2163_s22 + $0x8] sm:$0xff] %v974_v46  ;;  %v977_v50 = vadd.f32 %v1509_v44, %v976_v48  ;;  %v1650_v51 = vpop.f32.mrb[7].mxu1  ;;  %v980_v7 = vmax.f32 %v974_v46, 0.0 }
 0x1fd   : > { %v984_v52 = vsub.f32 0.0, %v982_v49  ;;  %v983_v53 = vand.u32 2147483647, %v977_v50  ;;  %1381 = vst [vmem:[%s2163_s22 + $0x28] sm:$0xff] %v977_v50  ;;  %v981_v12 = vmax.f32 %v977_v50, 0.0 }
 0x1ff   : > { %v986_v54 = vmul.f32 1.442695, %v984_v52  ;;  %v985_v55 = vsub.f32 0.0, %v983_v53  ;;  %v1839_v53 = vmov 14  }
 0x201   : > { %1808 = vpow2.f32 %v986_v54  ;;  %v988_v56 = vmul.f32 1.442695, %v985_v55 }
 0x203   : > { %1810 = vpow2.f32 %v988_v56 }
 0x20b   : > { %v1809_v57 = vpop.eup %1808 }
 0x20c   : > { %v990_v58 = vadd.f32 1.0, %v1809_v57  ;;  %v993_v61 = vmul.f32 -0.5, %v1809_v57  ;;  %v996_v0 = vand.u32 2147483647, %v1809_v57 }
 0x20d   : > { %v1811_v59 = vpop.eup %1810 }
 0x20e   : > { %1812 = vlog2.f32 %v990_v58  ;;  %v999_v60 = vadd.f32 1.0, %v1811_v59  ;;  %v1002_v62 = vmul.f32 -0.5, %v1811_v59  ;;  %v994_v63 = vadd.f32 1.0, %v993_v61 }
 0x20f   : > { %v1005_v3 = vand.u32 2147483647, %v1811_v59  ;;  %vm997_vm1 = vcmp.lt.f32.partialorder %v996_v0, 0.0004427343 }
 0x210   : > { %1814 = vlog2.f32 %v999_v60  ;;  %v1003_v1 = vadd.f32 1.0, %v1002_v62  ;;  %v995_v5 = vmul.f32 %v1809_v57, %v994_v63 }
 0x211   : > { %vm1006_vm2 = vcmp.lt.f32.partialorder %v1005_v3, 0.0004427343 }
 0x212   : > { %v1004_v10 = vmul.f32 %v1811_v59, %v1003_v1 }
 0x218   : > { %v1813_v2 = vpop.eup %1812 }
 0x219   : > { %v992_v4 = vmul.f32 0.6931472, %v1813_v2 }
 0x21a   : > { %v1815_v6 = vpop.eup %1814 }
 0x21b   : > { %v998_v8 = vsel %vm997_vm1, %v995_v5, %v992_v4  ;;  %v1001_v9 = vmul.f32 0.6931472, %v1815_v6 }
 0x21c   : > { %v1008_v11 = vadd.f32 %v998_v8, %v980_v7 }
 0x21d   : > { %v1007_v13 = vsel %vm1006_vm2, %v1004_v10, %v1001_v9 }
 0x21e   : > { %v1010_v14 = vadd.f32 1.0, %v1008_v11  ;;  %v1009_v15 = vadd.f32 %v1007_v13, %v981_v12 }
 0x220   : > { %1816 = vrcp.f32 %v1010_v14  ;;  %v1011_v16 = vadd.f32 1.0, %v1009_v15 }
 0x222   : > { %1818 = vrcp.f32 %v1011_v16 }
 0x22a   : > { %v1817_v19 = vpop.eup %1816 }
 0x22b   : > { %v1019_v21 = vsel %vm1018_vm3, %v974_v46, %v1817_v19 }
 0x22c   : > { %v1819_v20 = vpop.eup %1818 }
 0x22d   : > { %v1020_v22 = vsel %vm1018_vm3, %v977_v50, %v1819_v20 }
 0x22e   : > { %v1021_v23 = vpack.c.bf16 %v1020_v22, %v1019_v21 }
 0x230   : > { %1668 = vmatmul.mubr.bf16.vlgmr.msra.gmra.mrb[8].mxu0 %v1021_v23 }
 0x303   : > { %v2170_v25 = vpop.f32.mrb[8].mxu0 }
 0x304   : > { %1384 = vst [vmem:[%s2163_s22 + $0x18] sm:$0xff] %v2170_v25  ;;  %1335 = vperm.xlu1 %1714, %v2170_v25   ;;  %1315 = vperm.xlu0 %1713, %v2170_v25   ;;  %v1669_v26 = vpop.f32.mrb[9].mxu0 }
 0x305   : > { %v2176_v27 = vpop.f32.mrb[10].mxu0 }
 0x306   : > { %1385 = vst [vmem:[%s2163_s22 + $0x38] sm:$0xff] %v2176_v27  ;;  %v1670_v28 = vpop.f32.mrb[11].mxu0  ;;  %v1128_v29 = vpack.c.bf16 %v2176_v27, %v2170_v25 }
 0x308   : > { %1339 = vperm.xlu1 %1714, %v2176_v27   ;;  %1319 = vperm.xlu0 %1713, %v2176_v27  }
 0x309   : > { %1688 = vmatmul.mubr.bf16.vlgmr.msra.gmra.mrb[8].mxu1 %v1128_v29 }
 0x30c   : > { %1716 = vset.pattern.permute.xlu1 %v1832_v30  ;;  %1715 = vset.pattern.permute.xlu0 %v1833_v31 }
 0x30d   : > { %1305 = vperm.xlu1 %1716, %v2170_v25   ;;  %1255 = vperm.xlu0 %1715, %v2170_v25  }
 0x311   : > { %1717 = vset.pattern.permute.xlu1 %v1834_v32  ;;  %1718 = vset.pattern.permute.xlu0 %v1835_v33 }
 0x312   : > { %1275 = vperm.xlu1 %1717, %v2170_v25   ;;  %1355 = vperm.xlu0 %1718, %v2170_v25  }
 0x316   : > { %1719 = vset.pattern.permute.xlu1 %v1833_v31  ;;  %1720 = vset.pattern.permute.xlu0 %v1832_v30 }
 0x317   : > { %1259 = vperm.xlu1 %1719, %v2176_v27   ;;  %1309 = vperm.xlu0 %1720, %v2176_v27  }
 0x31b   : > { %1721 = vset.pattern.permute.xlu1 %v1834_v32  ;;  %1724 = vset.pattern.permute.xlu0 %v1836_v34 }
 0x31c   : > { %1279 = vperm.xlu1 %1721, %v2176_v27  }
 0x320   : > { %1722 = vset.pattern.permute.xlu1 %v1835_v33 }
 0x321   : > { %1359 = vperm.xlu1 %1722, %v2176_v27  }
 0x325   : > { %1723 = vset.pattern.permute.xlu1 %v1836_v34 }
 0x383   : > { %v1336_v35 = vpop.permute.xlu1 %1335  ;;  %v1316_v36 = vpop.permute.xlu0 %1315 }
 0x387   : > { %v1340_v42 = vpop.permute.xlu1 %1339  ;;  %v1320_v46 = vpop.permute.xlu0 %1319 }
 0x38c   : > { %v1306_v49 = vpop.permute.xlu1 %1305  ;;  %v1256_v52 = vpop.permute.xlu0 %1255 }
 0x391   : > { %v1276_v51 = vpop.permute.xlu1 %1275  ;;  %v1356_v60 = vpop.permute.xlu0 %1355 }
 0x396   : > { %v1260_v55 = vpop.permute.xlu1 %1259  ;;  %v1310_v62 = vpop.permute.xlu0 %1309 }
 0x39b   : > { %v1280_v58 = vpop.permute.xlu1 %1279 }
 0x3a0   : > { %v1360_v61 = vpop.permute.xlu1 %1359 }
 0x3dc   : > { %v1227_v38 = vpop.f32.mrb[8].mxu1 }
 0x3dd   : > { %v2195_v39 = vadd.f32 %v1534_v37, %v1227_v38  ;;  %v1689_v40 = vpop.f32.mrb[9].mxu1 }
 0x3de   : > { %v1230_v41 = vpop.f32.mrb[10].mxu1 }
 0x3df   : > { %1382 = vst [vmem:[%s2163_s22 + $0x10] sm:$0xff] %v2195_v39  ;;  %v1241_v43 = vadd.f32 %v1534_v37, %v1230_v41  ;;  %v1690_v44 = vpop.f32.mrb[11].mxu1  ;;  %v1322_v45 = vmul.f32 %v1316_v36, %v2195_v39  ;;  %v1342_v48 = vmul.f32 %v1336_v35, %v2195_v39  ;;  %v1262_v54 = vmul.f32 %v1256_v52, %v2195_v39 }
 0x3e0   : > { %v1282_v56 = vmul.f32 %v1276_v51, %v2195_v39  ;;  %v1312_v0 = vmul.f32 %v1306_v49, %v2195_v39 }
 0x3e1   : > { %1383 = vst [vmem:[%s2163_s22 + $0x30] sm:$0xff] %v1241_v43  ;;  %1326 = vrot.lane.b32.xlu1 %v1322_v45, %s1837_s25  ;;  %v1323_v47 = vmul.f32 %v1320_v46, %v1241_v43  ;;  %v1343_v50 = vmul.f32 %v1340_v42, %v1241_v43  ;;  %v1263_v57 = vmul.f32 %v1260_v55, %v1241_v43 }
 0x3e2   : > { %v1283_v59 = vmul.f32 %v1280_v58, %v1241_v43  ;;  %v1313_v3 = vmul.f32 %v1310_v62, %v1241_v43 }
 0x3e3   : > { %1328 = vrot.lane.b32.xlu0 %v1323_v47, %s1837_s25 }
 0x3e5   : > { %1346 = vrot.lane.b32.xlu1 %v1342_v48, %s1838_s26 }
 0x3e7   : > { %1348 = vrot.lane.b32.xlu0 %v1343_v50, %s1838_s26 }
 0x3e9   : > { %1244 = vperm.xlu1 %1723, %v2170_v25  }
 0x3eb   : > { %1249 = vperm.xlu0 %1724, %v2176_v27  }
 0x3ed   : > { %1725 = vset.pattern.permute.xlu1 %v1839_v53 }
 0x3ee   : > { %1295 = vperm.xlu1 %1725, %v2170_v25  }
 0x3ef   : > { %1266 = vrot.lane.b32.xlu0 %v1262_v54, %s1837_s25 }
 0x3f0   : > { %1726 = vset.pattern.permute.xlu0 %v1835_v33 }
 0x3f2   : > { %1299 = vperm.xlu1 %1725, %v2176_v27  }
 0x3f3   : > { %1286 = vrot.lane.b32.xlu0 %v1282_v56, %s1838_s26 }
 0x3f6   : > { %1268 = vrot.lane.b32.xlu1 %v1263_v57, %s1837_s25 }
 0x3fa   : > { %1288 = vrot.lane.b32.xlu1 %v1283_v59, %s1838_s26 }
 0x453   : > { %v1327_v63 = vpop.permute.xlu1 %1326 }
 0x454   : > { %v1332_v2 = vadd.f32 %v1327_v63, %v1312_v0 }
 0x455   : > { %v1329_v1 = vpop.permute.xlu0 %1328 }
 0x456   : > { %v1333_v5 = vadd.f32 %v1329_v1, %v1313_v3 }
 0x457   : > { %v1347_v4 = vpop.permute.xlu1 %1346 }
 0x458   : > { %v1352_v6 = vadd.f32 %v1347_v4, %v1332_v2 }
 0x459   : > { %v1349_v7 = vpop.permute.xlu0 %1348 }
 0x45a   : > { %v1362_v8 = vadd.f32 %v1356_v60, %v1352_v6  ;;  %v1353_v9 = vadd.f32 %v1349_v7, %v1333_v5 }
 0x45c   : > { %v1363_v10 = vadd.f32 %v1360_v61, %v1353_v9  ;;  %1366 = vrot.lane.b32.xlu0 %v1362_v8, %s1840_s29 }
 0x45e   : > { %1368 = vrot.lane.b32.xlu1 %v1363_v10, %s1840_s29 }
 0x468   : > { %v1245_v11 = vpop.permute.xlu1 %1244 }
 0x469   : > { %v1252_v17 = vmul.f32 %v1245_v11, %v2195_v39 }
 0x46a   : > { %v1250_v13 = vpop.permute.xlu0 %1249 }
 0x46b   : > { %v1253_v19 = vmul.f32 %v1250_v13, %v1241_v43 }
 0x46d   : > { %v1296_v12 = vpop.permute.xlu1 %1295 }
 0x46e   : > { %v1267_v15 = vpop.permute.xlu0 %1266 }
 0x46f   : > { %v1272_v20 = vadd.f32 %v1267_v15, %v1252_v17 }
 0x471   : > { %v1300_v14 = vpop.permute.xlu1 %1299 }
 0x472   : > { %v1287_v18 = vpop.permute.xlu0 %1286 }
 0x473   : > { %v1292_v22 = vadd.f32 %v1287_v18, %v1272_v20 }
 0x475   : > { %v1269_v16 = vpop.permute.xlu1 %1268  ;;  %v1302_v25 = vadd.f32 %v1296_v12, %v1292_v22 }
 0x476   : > { %v1273_v23 = vadd.f32 %v1269_v16, %v1253_v19 }
 0x479   : > { %v1289_v21 = vpop.permute.xlu1 %1288 }
 0x47a   : > { %v1293_v24 = vadd.f32 %v1289_v21, %v1273_v23 }
 0x47c   : > { %v1303_v27 = vadd.f32 %v1300_v14, %v1293_v24 }
 0x4ce   : > { %v1367_v26 = vpop.permute.xlu0 %1366 }
 0x4cf   : > { %v1373_v28 = vsel %vm1372_vm4, %v1302_v25, %v1367_v26 }
 0x4d0   : > { %v1376_v29 = vsel %vm1375_vm5, %v1373_v28, 0.0  ;;  %v1369_v30 = vpop.permute.xlu1 %1368 }
 0x4d1   : > { %1378 = vst [vmem:[%s2163_s22] sm:$0xff] %v1376_v29  ;;  %v1374_v31 = vsel %vm1372_vm4, %v1303_v27, %v1369_v30 }
 0x4d2   : > { %v1377_v32 = vsel %vm1375_vm5, %v1374_v31, 0.0 }
 0x4d3   : > { %1379 = vst [vmem:[%s2163_s22 + $0x20] sm:$0xff] %v1377_v32 }
 0x4d4 PF: > { %s18_s27 = sadd.s32 1, %s1826_s27  }
 0x4d5   : > { %p15_p4 = scmp.ge.s32.totalorder %s18_s27, 4  }
 0x4d7   :  { %17 = sbr.rel (!%p15_p4) target bundleno = 1 (0x1), region = 82 }

</bundles_post_ra>
